<compile_context>
chip_gen: v7x
topology: tpu7x:2x2x1
jax: 0.10.0
libtpu: 0.0.40
codegen_flags: <defaults>
</compile_context>

<pallas_src>
import numpy as np
import jax
import jax.numpy as jnp
from jax.experimental import pallas as pl
from jax.experimental.pallas import tpu as pltpu

MED_FRQ = [0.3829, 0.452448, 0.637584, 0.377464, 0.585595, 0.479574, 0.781544,
           0.982534, 1.017466, 0.624581, 2.589096, 0.980794, 0.92034, 0.667984,
           1.172291, 0.86224, 0.921714, 2.154782, 1.187832, 1.178115, 1.848545,
           1.428922, 2.849658, 0.771605, 1.656668, 4.483506, 2.209922, 1.12028,
           2.790182, 0.706519, 3.994768, 2.220004, 0.972934, 1.481525, 5.342475,
           0.750738, 4.040773]
NUM_CLASSES = len(MED_FRQ)   # 37


def _ce_kernel(w_ref, x_ref, t_ref, sum_ref, cnt_ref, acc_sum, acc_cnt):
    """One (image n, pixel-tile j) step: weighted CE on T pixels, classes on sublanes."""
    j = pl.program_id(1)

    @pl.when(j == 0)
    def _():
        acc_sum[...] = jnp.zeros_like(acc_sum)
        acc_cnt[...] = jnp.zeros_like(acc_cnt)

    x = x_ref[0].astype(jnp.float32)   # (C, T) logits: classes on sublanes, pixels on lanes
    t = t_ref[0]                       # (1, T) int32 raw targets (0 = ignore)
    w = w_ref[0]                       # (C, 1) f32 class weights

    mask = t > 0                       # (1, T) valid-pixel mask
    tm = jnp.where(mask, t - 1, 0)     # shifted class index, 0 for ignored pixels

    # log-softmax statistics over the class (sublane) axis
    m = jnp.max(x, axis=0, keepdims=True)                              # (1, T)
    lse = jnp.log(jnp.sum(jnp.exp(x - m), axis=0, keepdims=True)) + m  # (1, T)

    # gather logit / weight at the target class via a one-hot sublane select
    iota = jax.lax.broadcasted_iota(jnp.int32, x.shape, 0)             # (C, T)
    hit = iota == tm                                                   # (C, T)
    x_t = jnp.sum(jnp.where(hit, x, 0.0), axis=0, keepdims=True)       # (1, T)
    w_t = jnp.sum(jnp.where(hit, w, 0.0), axis=0, keepdims=True)       # (1, T)

    loss = -w_t * (x_t - lse)          # (1, T) weighted CE per pixel
    maskf = mask.astype(jnp.float32)

    acc_sum[...] += loss * maskf       # per-lane partials, pure VPU
    acc_cnt[...] += maskf

    @pl.when(j == pl.num_programs(1) - 1)
    def _():
        sum_ref[0] = jnp.sum(acc_sum[...], keepdims=True)
        cnt_ref[0] = jnp.sum(acc_cnt[...], keepdims=True)


def _pick_pixel_tile(hw):
    """Largest nice lane-tile dividing HW; fall back to full dim or padding."""
    for cand in (2048, 1024, 512, 256, 128):
        if hw % cand == 0:
            return cand, 0
    if hw <= 4096:
        return hw, 0                    # full last dim is always a legal block dim
    pad = (-hw) % 2048
    return 2048, pad


def cross_entropy_loss_2d_eval(inputs, targets, weight=MED_FRQ):
    """Pallas equivalent of CrossEntropyLoss2d_eval.forward (single-scale NCHW + NHW)."""
    N, C, H, W = inputs.shape
    HW = H * W
    x = inputs.reshape(N, C, HW)                      # free: NCHW is contiguous
    t = targets.reshape(N, 1, HW).astype(jnp.int32)

    t_hw, pad = _pick_pixel_tile(HW)
    if pad:
        x = jnp.pad(x, ((0, 0), (0, 0), (0, pad)))
        t = jnp.pad(t, ((0, 0), (0, 0), (0, pad)))    # padded targets = 0 -> masked out
        HW += pad

    w = jnp.asarray(weight, jnp.float32).reshape(1, C, 1)
    grid = (N, HW // t_hw)

    sums, cnts = pl.pallas_call(
        _ce_kernel,
        out_shape=(jax.ShapeDtypeStruct((N, 1, 1), jnp.float32),
                   jax.ShapeDtypeStruct((N, 1, 1), jnp.float32)),
        grid_spec=pltpu.PrefetchScalarGridSpec(
            num_scalar_prefetch=0,
            grid=grid,
            in_specs=[
                pl.BlockSpec((1, C, 1), lambda n, j: (0, 0, 0)),      # class weights
                pl.BlockSpec((1, C, t_hw), lambda n, j: (n, 0, j)),   # logits tile
                pl.BlockSpec((1, 1, t_hw), lambda n, j: (n, 0, j)),   # targets tile
            ],
            out_specs=[
                pl.BlockSpec((1, 1, 1), lambda n, j: (n, 0, 0)),      # per-image loss sum
                pl.BlockSpec((1, 1, 1), lambda n, j: (n, 0, 0)),      # per-image mask count
            ],
            scratch_shapes=[pltpu.VMEM((1, t_hw), jnp.float32),
                            pltpu.VMEM((1, t_hw), jnp.float32)],
        ),
        compiler_params=pltpu.CompilerParams(
            dimension_semantics=("parallel", "arbitrary"),
            vmem_limit_bytes=48 * 1024 * 1024,
        ),
    )(w, x, t)

    # Matches the reference: a batch with zero valid pixels yields NaN in both.
    return jnp.sum(sums) / jnp.sum(cnts)


def _reference_ce_loss_2d_eval(inputs, targets, weight=MED_FRQ):
    """Pure-JAX reference mirroring the PyTorch module semantics."""
    w = jnp.asarray(weight, jnp.float32)
    logits = inputs.astype(jnp.float32)
    mask = targets > 0
    tm = jnp.where(mask, targets - 1, 0)
    logp = jax.nn.log_softmax(logits, axis=1)
    logp_t = jnp.take_along_axis(logp, tm[:, None, :, :], axis=1)[:, 0]
    loss_all = -w[tm] * logp_t
    return jnp.sum(jnp.where(mask, loss_all, 0.0)) / jnp.sum(mask.astype(jnp.float32))


if __name__ == "__main__":
    key = jax.random.PRNGKey(0)
    k1, k2 = jax.random.split(key, 2)

    N, H, W = 2, 16, 16
    inputs = jax.random.normal(k1, (N, NUM_CLASSES, H, W), jnp.float32)
    # Targets in [0, NUM_CLASSES]; 0 means "ignore" (mask=False).
    targets = jax.random.randint(k2, (N, H, W), 0, NUM_CLASSES + 1, jnp.int32)

    out = cross_entropy_loss_2d_eval(inputs, targets)
    out = jax.block_until_ready(out)

    ref = jax.block_until_ready(_reference_ce_loss_2d_eval(inputs, targets))
    np.testing.assert_allclose(np.asarray(out), np.asarray(ref), rtol=1e-4, atol=1e-5)

    print("KERNEL_OK")
</pallas_src>

<mosaic_0001>
module attributes {stable_mosaic.version = 11 : i64} {
  func.func @_ce_kernel(%arg0: i32, %arg1: i32, %arg2: memref<1x37x1xf32, #tpu.memory_space<vmem>>, %arg3: memref<1x37x256xf32, #tpu.memory_space<vmem>>, %arg4: memref<1x1x256xi32, #tpu.memory_space<vmem>>, %arg5: memref<1x1x1xf32, #tpu.memory_space<vmem>>, %arg6: memref<1x1x1xf32, #tpu.memory_space<vmem>>, %arg7: memref<1x256xf32, #tpu.memory_space<vmem>>, %arg8: memref<1x256xf32, #tpu.memory_space<vmem>>) attributes {dimension_semantics = [#tpu.dimension_semantics<parallel>, #tpu.dimension_semantics<arbitrary>], iteration_bounds = array<i64: 2, 1>, scalar_prefetch = 0 : i64, scratch_operands = 2 : i64, tpu.core_type = #tpu.core_type<tc>, window_params = [{pipeline_mode = #tpu.pipeline_mode<synchronous>, transform_indices = @transform_0, window_bounds = array<i64: 1, 37, 1>}, {transform_indices = @transform_1, window_bounds = array<i64: 1, 37, 256>}, {transform_indices = @transform_2, window_bounds = array<i64: 1, 1, 256>}, {transform_indices = @transform_3, window_bounds = array<i64: 1, 1, 1>}, {transform_indices = @transform_4, window_bounds = array<i64: 1, 1, 1>}]} {
    %c0_i32 = arith.constant 0 : i32
    %0 = arith.cmpi eq, %arg1, %c0_i32 : i32
    %1 = arith.extui %0 : i1 to i32
    %c0_i32_0 = arith.constant 0 : i32
    %2 = arith.cmpi ne, %1, %c0_i32_0 : i32
    scf.if %2 {
      %cst_27 = arith.constant 0.000000e+00 : f32
      %53 = vector.broadcast %cst_27 : f32 to vector<1x256xf32>
      %c0_28 = arith.constant 0 : index
      %c0_29 = arith.constant 0 : index
      %54 = vector.load %arg7[%c0_28, %c0_29] : memref<1x256xf32, #tpu.memory_space<vmem>>, vector<1x256xf32>
      tpu.vector_store %arg7[%c0_28, %c0_29], %53 {strides = array<i32>} : memref<1x256xf32, #tpu.memory_space<vmem>>, vector<1x256xf32>,
      %cst_30 = arith.constant 0.000000e+00 : f32
      %55 = vector.broadcast %cst_30 : f32 to vector<1x256xf32>
      %c0_31 = arith.constant 0 : index
      %c0_32 = arith.constant 0 : index
      %56 = vector.load %arg8[%c0_31, %c0_32] : memref<1x256xf32, #tpu.memory_space<vmem>>, vector<1x256xf32>
      tpu.vector_store %arg8[%c0_31, %c0_32], %55 {strides = array<i32>} : memref<1x256xf32, #tpu.memory_space<vmem>>, vector<1x256xf32>,
    } else {
    }
    %c0 = arith.constant 0 : index
    %c0_1 = arith.constant 0 : index
    %c0_2 = arith.constant 0 : index
    %3 = vector.load %arg3[%c0, %c0_1, %c0_2] : memref<1x37x256xf32, #tpu.memory_space<vmem>>, vector<1x37x256xf32>
    %4 = vector.shape_cast %3 : vector<1x37x256xf32> to vector<37x256xf32>
    %c0_3 = arith.constant 0 : index
    %c0_4 = arith.constant 0 : index
    %c0_5 = arith.constant 0 : index
    %5 = vector.load %arg4[%c0_3, %c0_4, %c0_5] : memref<1x1x256xi32, #tpu.memory_space<vmem>>, vector<1x1x256xi32>
    %6 = vector.shape_cast %5 : vector<1x1x256xi32> to vector<1x256xi32>
    %c0_6 = arith.constant 0 : index
    %c0_7 = arith.constant 0 : index
    %c0_8 = arith.constant 0 : index
    %7 = vector.load %arg2[%c0_6, %c0_7, %c0_8] : memref<1x37x1xf32, #tpu.memory_space<vmem>>, vector<1x37x1xf32>
    %8 = vector.shape_cast %7 : vector<1x37x1xf32> to vector<37x1xf32>
    %c0_i32_9 = arith.constant 0 : i32
    %9 = vector.broadcast %c0_i32_9 : i32 to vector<1x256xi32>
    %10 = arith.cmpi sgt, %6, %9 : vector<1x256xi32>
    %c1_i32 = arith.constant 1 : i32
    %11 = vector.broadcast %c1_i32 : i32 to vector<1x256xi32>
    %12 = arith.subi %6, %11 : vector<1x256xi32>
    %c0_i32_10 = arith.constant 0 : i32
    %13 = vector.broadcast %c0_i32_10 : i32 to vector<1x256xi32>
    %14 = arith.select %10, %12, %13 : vector<1x256xi1>, vector<1x256xi32>
    %cst = arith.constant dense<0xFF800000> : vector<256xf32>
    %15 = vector.multi_reduction <maximumf>, %4, %cst [0] : vector<37x256xf32> to vector<256xf32>
    %16 = vector.shape_cast %15 : vector<256xf32> to vector<1x256xf32>
    %17 = vector.broadcast %16 : vector<1x256xf32> to vector<37x256xf32>
    %18 = arith.subf %4, %17 : vector<37x256xf32>
    %19 = math.exp %18 : vector<37x256xf32>
    %cst_11 = arith.constant dense<0.000000e+00> : vector<256xf32>
    %20 = vector.multi_reduction <add>, %19, %cst_11 [0] : vector<37x256xf32> to vector<256xf32>
    %21 = vector.shape_cast %20 : vector<256xf32> to vector<1x256xf32>
    %22 = math.log %21 : vector<1x256xf32>
    %23 = arith.addf %22, %16 : vector<1x256xf32>
    %24 = tpu.iota {dimensions = array<i32: 0>} : vector<37x256xi32>
    %25 = vector.broadcast %14 : vector<1x256xi32> to vector<37x256xi32>
    %26 = arith.cmpi eq, %24, %25 : vector<37x256xi32>
    %cst_12 = arith.constant 0.000000e+00 : f32
    %27 = vector.broadcast %cst_12 : f32 to vector<37x256xf32>
    %28 = arith.select %26, %4, %27 : vector<37x256xi1>, vector<37x256xf32>
    %cst_13 = arith.constant dense<0.000000e+00> : vector<256xf32>
    %29 = vector.multi_reduction <add>, %28, %cst_13 [0] : vector<37x256xf32> to vector<256xf32>
    %30 = vector.shape_cast %29 : vector<256xf32> to vector<1x256xf32>
    %cst_14 = arith.constant 0.000000e+00 : f32
    %31 = vector.shape_cast %8 : vector<37x1xf32> to vector<37x1xf32>
    %32 = vector.broadcast %31 : vector<37x1xf32> to vector<37x256xf32>
    %33 = vector.broadcast %cst_14 : f32 to vector<37x256xf32>
    %34 = arith.select %26, %32, %33 : vector<37x256xi1>, vector<37x256xf32>
    %cst_15 = arith.constant dense<0.000000e+00> : vector<256xf32>
    %35 = vector.multi_reduction <add>, %34, %cst_15 [0] : vector<37x256xf32> to vector<256xf32>
    %36 = vector.shape_cast %35 : vector<256xf32> to vector<1x256xf32>
    %cst_16 = arith.constant 0.000000e+00 : f32
    %37 = vector.broadcast %cst_16 : f32 to vector<1x256xf32>
    %38 = arith.subf %37, %36 : vector<1x256xf32>
    %39 = arith.subf %30, %23 : vector<1x256xf32>
    %40 = arith.mulf %38, %39 : vector<1x256xf32>
    %41 = arith.extui %10 : vector<1x256xi1> to vector<1x256xi32>
    %42 = arith.sitofp %41 : vector<1x256xi32> to vector<1x256xf32>
    %c0_17 = arith.constant 0 : index
    %c0_18 = arith.constant 0 : index
    %43 = vector.load %arg7[%c0_17, %c0_18] : memref<1x256xf32, #tpu.memory_space<vmem>>, vector<1x256xf32>
    %44 = arith.mulf %40, %42 : vector<1x256xf32>
    %45 = arith.addf %43, %44 : vector<1x256xf32>
    %c0_19 = arith.constant 0 : index
    %c0_20 = arith.constant 0 : index
    %46 = vector.load %arg7[%c0_19, %c0_20] : memref<1x256xf32, #tpu.memory_space<vmem>>, vector<1x256xf32>
    tpu.vector_store %arg7[%c0_19, %c0_20], %45 {strides = array<i32>} : memref<1x256xf32, #tpu.memory_space<vmem>>, vector<1x256xf32>,
    %c0_21 = arith.constant 0 : index
    %c0_22 = arith.constant 0 : index
    %47 = vector.load %arg8[%c0_21, %c0_22] : memref<1x256xf32, #tpu.memory_space<vmem>>, vector<1x256xf32>
    %48 = arith.addf %47, %42 : vector<1x256xf32>
    %c0_23 = arith.constant 0 : index
    %c0_24 = arith.constant 0 : index
    %49 = vector.load %arg8[%c0_23, %c0_24] : memref<1x256xf32, #tpu.memory_space<vmem>>, vector<1x256xf32>
    tpu.vector_store %arg8[%c0_23, %c0_24], %48 {strides = array<i32>} : memref<1x256xf32, #tpu.memory_space<vmem>>, vector<1x256xf32>,
    %c0_i32_25 = arith.constant 0 : i32
    %50 = arith.cmpi eq, %arg1, %c0_i32_25 : i32
    %51 = arith.extui %50 : i1 to i32
    %c0_i32_26 = arith.constant 0 : i32
    %52 = arith.cmpi ne, %51, %c0_i32_26 : i32
    scf.if %52 {
      %c0_27 = arith.constant 0 : index
      %c0_28 = arith.constant 0 : index
      %53 = vector.load %arg7[%c0_27, %c0_28] : memref<1x256xf32, #tpu.memory_space<vmem>>, vector<1x256xf32>
      %54 = vector.shape_cast %53 : vector<1x256xf32> to vector<1x1x256xf32>
      %cst_29 = arith.constant dense<0.000000e+00> : vector<1xf32>
      %55 = vector.multi_reduction <add>, %54, %cst_29 [1, 2] : vector<1x1x256xf32> to vector<1xf32>
      %56 = vector.shape_cast %55 : vector<1xf32> to vector<1x1x1xf32>
      %57 = vector.extract %56[0, 0, 0] : f32 from vector<1x1x1xf32>
      %58 = vector.broadcast %57 : f32 to vector<1x1xf32>
      %c0_30 = arith.constant 0 : index
      %c0_31 = arith.constant 0 : index
      %c0_32 = arith.constant 0 : index
      %59 = vector.load %arg5[%c0_30, %c0_31, %c0_32] : memref<1x1x1xf32, #tpu.memory_space<vmem>>, vector<1x1x1xf32>
      %60 = vector.shape_cast %59 : vector<1x1x1xf32> to vector<1x1xf32>
      %61 = vector.shape_cast %58 : vector<1x1xf32> to vector<1x1x1xf32>
      tpu.vector_store %arg5[%c0_30, %c0_31, %c0_32], %61 {strides = array<i32>} : memref<1x1x1xf32, #tpu.memory_space<vmem>>, vector<1x1x1xf32>,
      %c0_33 = arith.constant 0 : index
      %c0_34 = arith.constant 0 : index
      %62 = vector.load %arg8[%c0_33, %c0_34] : memref<1x256xf32, #tpu.memory_space<vmem>>, vector<1x256xf32>
      %63 = vector.shape_cast %62 : vector<1x256xf32> to vector<1x1x256xf32>
      %cst_35 = arith.constant dense<0.000000e+00> : vector<1xf32>
      %64 = vector.multi_reduction <add>, %63, %cst_35 [1, 2] : vector<1x1x256xf32> to vector<1xf32>
      %65 = vector.shape_cast %64 : vector<1xf32> to vector<1x1x1xf32>
      %66 = vector.extract %65[0, 0, 0] : f32 from vector<1x1x1xf32>
      %67 = vector.broadcast %66 : f32 to vector<1x1xf32>
      %c0_36 = arith.constant 0 : index
      %c0_37 = arith.constant 0 : index
      %c0_38 = arith.constant 0 : index
      %68 = vector.load %arg6[%c0_36, %c0_37, %c0_38] : memref<1x1x1xf32, #tpu.memory_space<vmem>>, vector<1x1x1xf32>
      %69 = vector.shape_cast %68 : vector<1x1x1xf32> to vector<1x1xf32>
      %70 = vector.shape_cast %67 : vector<1x1xf32> to vector<1x1x1xf32>
      tpu.vector_store %arg6[%c0_36, %c0_37, %c0_38], %70 {strides = array<i32>} : memref<1x1x1xf32, #tpu.memory_space<vmem>>, vector<1x1x1xf32>,
    } else {
    }
    return
  }
  func.func @transform_0(%arg0: i32, %arg1: i32) -> (i32, i32, i32) {
    %c0_i32 = arith.constant 0 : i32
    %c0_i32_0 = arith.constant 0 : i32
    %c0_i32_1 = arith.constant 0 : i32
    %c0_i32_2 = arith.constant 0 : i32
    return %c0_i32, %c0_i32_0, %c0_i32_1 : i32, i32, i32
  }
  func.func @transform_1(%arg0: i32, %arg1: i32) -> (i32, i32, i32) {
    %c0_i32 = arith.constant 0 : i32
    %c0_i32_0 = arith.constant 0 : i32
    return %arg0, %c0_i32, %arg1 : i32, i32, i32
  }
  func.func @transform_2(%arg0: i32, %arg1: i32) -> (i32, i32, i32) {
    %c0_i32 = arith.constant 0 : i32
    %c0_i32_0 = arith.constant 0 : i32
    return %arg0, %c0_i32, %arg1 : i32, i32, i32
  }
  func.func @transform_3(%arg0: i32, %arg1: i32) -> (i32, i32, i32) {
    %c0_i32 = arith.constant 0 : i32
    %c0_i32_0 = arith.constant 0 : i32
    %c0_i32_1 = arith.constant 0 : i32
    return %arg0, %c0_i32, %c0_i32_0 : i32, i32, i32
  }
  func.func @transform_4(%arg0: i32, %arg1: i32) -> (i32, i32, i32) {
    %c0_i32 = arith.constant 0 : i32
    %c0_i32_0 = arith.constant 0 : i32
    %c0_i32_1 = arith.constant 0 : i32
    return %arg0, %c0_i32, %c0_i32_0 : i32, i32, i32
  }
}

</mosaic_0001>

<bundles_post_ra>
// kernel: tpu_custom_call.1
= control target key start
LH: loop header
LB: loop body
LE: loop exit
PB: predicated region body
PF: predicated region fallthrough
CT: control target
= control target key end

     0   :  { %s815_s15 = smov 0   ;;  %s817_s16 = smov 0   ;;  %s1103_s0 = inlined_call_operand.vmem [shape: f32[1,37,1], index: 0, kind: input, shape index: {}]   ;;  %s1104_s1 = inlined_call_operand.vmem [shape: f32[2,37,256], index: 1, kind: input, shape index: {}]   ;;  %s1105_s2 = inlined_call_operand.vmem [shape: s32[2,1,256], index: 2, kind: input, shape index: {}]   ;;  %s1106_s3 = inlined_call_operand.vmem [shape: f32[2,1,1], index: 3, kind: output, shape index: {0}]   ;;  %s1107_s4 = inlined_call_operand.vmem [shape: f32[2,1,1], index: 4, kind: output, shape index: {1}]  }
   0x1   :  { %s819_s17 = smov 0  }
   0x2 LB: > { %s27_s18 = sadd.s32 1, %s781_s16  ;;  %p698_p0 = scmp.ge.s32.totalorder %s785_s17, 1  ;;  %s785_s17 = sphi %s819_s17, %s15_s17   ;;  %s781_s16 = sphi %s817_s16, %s1111_s16   ;;  %s777_s15 = sphi %s815_s15, %s1110_s15  }
   0x3   : > { %p29_p1 = scmp.ge.s32.totalorder %s27_s18, 2  ;;  %p200_p2 = scmp.lt.s32.totalorder %s785_s17, 3 }
   0x5   : > { %s1113_s18 = smov (%p29_p1, %s27_s18), 0  ;;  %p201_p3 = pnand %p698_p0, %p200_p2 }
   0x6   : > { %v287_v0 = vld [vmem:[%s1103_s0 + $0x10] sm:$0xff] (!%p201_p3)  ;;  %v285_v1 = vld [vmem:[%s1103_s0] sm:$0xff] (!%p201_p3)  ;;  %p240_p4 = scmp.lt.s32.totalorder (!%p201_p3), %s777_s15, 1  ;;  %v268_v2 = vlaneseq (!%p201_p3)  ;;  %v787_v3 = vmov (!%p201_p3), 0   ;;  %v288_v6 = vld [vmem:[%s1103_s0 + $0x18] sm:$0xff] (!%p201_p3)  ;;  %v788_v8 = vmov (!%p201_p3), 0.0  }
   0x7   : > { %204 = sbr.rel (%p201_p3) target bundleno = 395 (0x18b), region = 32  ;;  %738 = vset.pattern.permute.xlu1 (!%p201_p3), %v787_v3  ;;  %737 = vset.pattern.permute.xlu0 (!%p201_p3), %v787_v3  ;;  %v286_v7 = vld [vmem:[%s1103_s0 + $0x8] sm:$0xff] (!%p201_p3)  ;;  %v289_v12 = vld [vmem:[%s1103_s0 + $0x20] sm:$0x1f] (!%p201_p3)  ;;  %vm295_vm12 = vcmask (!%p201_p3), 1044480   ;;  %vm551_vm13 = vcmask (!%p201_p3), 1040384  }
   0x8   : > { %442 = vperm.xlu1 (!%p201_p3), %738, %v287_v0   ;;  %432 = vperm.xlu0 (!%p201_p3), %737, %v285_v1   ;;  %vm841_vm0 = vcmp.lt.s32.totalorder (!%p201_p3), %v268_v2, 256  ;;  %v845_v5 = vshrl.u32 (!%p201_p3), %v268_v2, 7  ;;  %vm565_vm14 = vcmask (!%p201_p3), 0  }
   0x9   : > { %272 = vst.msk [vmem:[#allocation2] sm:$0x3] (!%p201_p3), %vm841_vm0, %v788_v8  ;;  %273 = vst.msk [vmem:[#allocation3] sm:$0x3] (!%p201_p3), %vm841_vm0, %v788_v8 }
   0xa   : > { %v863_v10 = vsub.s32 (!%p201_p3), 0, %v845_v5  ;;  %v866_v11 = vsub.s32 (!%p201_p3), 1, %v845_v5  ;;  %v872_v14 = vadd.s32 (!%p201_p3), 16, %v845_v5  ;;  %v880_v16 = vadd.s32 (!%p201_p3), 24, %v845_v5 }
   0xb   : > { %v891_v21 = vadd.s32 (!%p201_p3), 8, %v845_v5  ;;  %v922_v28 = vadd.s32 (!%p201_p3), 32, %v845_v5 }
   0xc   : > { %447 = vperm.xlu1 (!%p201_p3), %738, %v288_v6   ;;  %437 = vperm.xlu0 (!%p201_p3), %737, %v286_v7  }
   0xe   : > { %s1115_s15 = smov (!%p240_p4, %s777_s15), 1 }
   0xf   : > { %s700_s27 = sshll.u32 %s1115_s15, 1  ;;  %s705_s28 = smul.u32 80, %s1115_s15 }
  0x10   : > { %s256_s5 = scalar_lea.vmem %s1105_s2, %s700_s27  ;;  %452 = vperm.xlu0 %737, %v289_v12   ;;  %v533_v20 = vld [vmem:[#allocation3] sm:$0x3]  ;;  %s260_s13 = scalar_lea.vmem %s1106_s3, %s1115_s15 }
  0x11   : > { %v284_v9 = vld [vmem:[%s256_s5] sm:$0x3]  ;;  %s877_s10 = scalar_lea.vmem %s1104_s1, %s705_s28  ;;  %s263_s21 = scalar_lea.vmem %s1107_s4, %s1115_s15 }
  0x12   : > { %vm290_vm1 = vcmp.gt.s32.totalorder %v284_v9, 0  ;;  %v701_v13 = vadd.s32 4294967295, %v284_v9  ;;  %v899_v23 = vld [vmem:[%s877_s10] sm:$0xff]  ;;  %v902_v24 = vld [vmem:[%s877_s10 + $0x8] sm:$0xff]  ;;  %v932_v30 = vld [vmem:[%s877_s10 + $0x10] sm:$0xff] }
  0x13   : > { %v888_v19 = vsel %vm290_vm1, 1.0, %v788_v8  ;;  %v909_v25 = vld [vmem:[%s877_s10 + $0x20] sm:$0xff]  ;;  %v925_v29 = vld [vmem:[%s877_s10 + $0x28] sm:$0xff]  ;;  %v935_v31 = vld [vmem:[%s877_s10 + $0x18] sm:$0xff] }
  0x14   : > { %v292_v15 = vsel %vm290_vm1, %v701_v13, 0  ;;  %v534_v22 = vadd.f32 %v888_v19, %v533_v20  ;;  %v958_v36 = vld [vmem:[%s877_s10 + $0x30] sm:$0xff]  ;;  %v961_v37 = vld [vmem:[%s877_s10 + $0x38] sm:$0xff]  ;;  %v972_v42 = vld [vmem:[%s877_s10 + $0x40] sm:$0x1f]  ;;  %v293_v54 = vmax.f32 %v899_v23, %v909_v25  ;;  %v305_v55 = vmax.f32 %v902_v24, %v925_v29 }
  0x15   : > { %v883_v17 = vrot.slane %v292_v15, %v863_v10  ;;  %v886_v18 = vrot.slane %v292_v15, %v866_v11  ;;  %v979_v45 = vld [vmem:[%s877_s10 + $0x48] sm:$0x1f]  ;;  %v296_v56 = vsel %vm295_vm12, %v972_v42, -inf  ;;  %v294_v58 = vmax.f32 %v932_v30, %v958_v36 }
  0x16   : > { %535 = vst.msk [vmem:[#allocation3] sm:$0x3] %vm841_vm0, %v534_v22  ;;  %v307_v57 = vsel %vm295_vm12, %v979_v45, -inf  ;;  %v297_v59 = vmax.f32 %v293_v54, %v296_v56  ;;  %v306_v60 = vmax.f32 %v935_v31, %v961_v37 }
  0x17   : > { %vm392_vm2 = vcmp.eq.s32.totalorder %v872_v14, %v883_v17  ;;  %vm393_vm3 = vcmp.eq.s32.totalorder %v872_v14, %v886_v18  ;;  %vm388_vm4 = vcmp.eq.s32.totalorder %v845_v5, %v883_v17  ;;  %vm389_vm5 = vcmp.eq.s32.totalorder %v845_v5, %v886_v18 }
  0x18   : > { %v398_v26 = vsel %vm388_vm4, %v899_v23, 0.0  ;;  %v399_v27 = vsel %vm389_vm5, %v902_v24, 0.0  ;;  %vm394_vm6 = vcmp.eq.s32.totalorder %v880_v16, %v883_v17  ;;  %vm395_vm7 = vcmp.eq.s32.totalorder %v880_v16, %v886_v18 }
  0x19   : > { %vm390_vm8 = vcmp.eq.s32.totalorder %v891_v21, %v883_v17  ;;  %vm391_vm9 = vcmp.eq.s32.totalorder %v891_v21, %v886_v18  ;;  %v402_v32 = vsel %vm392_vm2, %v909_v25, 0.0  ;;  %v403_v33 = vsel %vm393_vm3, %v925_v29, 0.0 }
  0x1a   : > { %v400_v34 = vsel %vm390_vm8, %v932_v30, 0.0  ;;  %v401_v35 = vsel %vm391_vm9, %v935_v31, 0.0  ;;  %v404_v40 = vsel %vm394_vm6, %v958_v36, 0.0  ;;  %v405_v41 = vsel %vm395_vm7, %v961_v37, 0.0 }
  0x1b   : > { %v408_v38 = vadd.f32 %v400_v34, %v398_v26  ;;  %v419_v39 = vadd.f32 %v401_v35, %v399_v27  ;;  %vm396_vm10 = vcmp.eq.s32.totalorder %v922_v28, %v883_v17  ;;  %vm397_vm11 = vcmp.eq.s32.totalorder %v922_v28, %v886_v18 }
  0x1c   : > { %v406_v46 = vsel %vm396_vm10, %v972_v42, 0.0  ;;  %v407_v47 = vsel %vm397_vm11, %v979_v45, 0.0  ;;  %v308_v61 = vmax.f32 %v305_v55, %v307_v57  ;;  %v298_v62 = vmax.f32 %v297_v59, %v294_v58 }
  0x1d   : > { %v409_v43 = vadd.f32 %v408_v38, %v402_v32  ;;  %v420_v44 = vadd.f32 %v419_v39, %v403_v33  ;;  %v411_v48 = vsel %vm295_vm12, %v406_v46, 0.0  ;;  %v422_v51 = vsel %vm295_vm12, %v407_v47, 0.0  ;;  %v567_v0 = vld [vmem:[#allocation3] sm:$0x3] }
  0x1e   : > { %v309_v63 = vmax.f32 %v308_v61, %v306_v60  ;;  %v572_v1 = vrot.slane %v567_v0, %v863_v10  ;;  %v576_v2 = vrot.slane %v567_v0, %v866_v11  ;;  %v299_v3 = vrot.slane %v298_v62, 4 }
  0x1f   : > { %v410_v49 = vadd.f32 %v409_v43, %v404_v40  ;;  %v421_v50 = vadd.f32 %v420_v44, %v405_v41 }
  0x20   : > { %v579_v6 = vsel %vm551_vm13, %v572_v1, 0.0  ;;  %v580_v7 = vsel %vm551_vm13, %v576_v2, 0.0  ;;  %v310_v8 = vrot.slane %v309_v63, 4  ;;  %v300_v12 = vmax.f32 %v298_v62, %v299_v3 }
  0x21   : > { %v991_v52 = vadd.f32 %v411_v48, %v410_v49  ;;  %v993_v53 = vadd.f32 %v422_v51, %v421_v50  ;;  %v581_v9 = vadd.f32 %v580_v7, %v579_v6 }
  0x22   : > { %v311_v13 = vmax.f32 %v309_v63, %v310_v8  ;;  %v301_v15 = vrot.slane %v300_v12, 2 }
  0x24   : > { %v312_v20 = vrot.slane %v311_v13, 2  ;;  %v302_v22 = vmax.f32 %v300_v12, %v301_v15 }
  0x26   : > { %v313_v26 = vmax.f32 %v311_v13, %v312_v20  ;;  %v303_v27 = vrot.slane %v302_v22, 1 }
  0x28   : > { %v314_v32 = vrot.slane %v313_v26, 1  ;;  %v1011_v33 = vmax.f32 %v302_v22, %v303_v27 }
  0x2a   : > { %v1013_v34 = vmax.f32 %v313_v26, %v314_v32  ;;  %v316_v35 = vsub.f32 %v899_v23, %v1011_v33  ;;  %v318_v39 = vsub.f32 %v932_v30, %v1011_v33  ;;  %v320_v44 = vsub.f32 %v909_v25, %v1011_v33 }
  0x2b   : > { %v322_v23 = vsub.f32 %v958_v36, %v1011_v33 }
  0x2c   : > { %v317_v38 = vsub.f32 %v902_v24, %v1013_v34  ;;  %v319_v40 = vsub.f32 %v935_v31, %v1013_v34  ;;  %v326_v41 = vmul.f32 1.442695, %v316_v35  ;;  %v330_v46 = vmul.f32 1.442695, %v318_v39 }
  0x2d   : > { %v321_v47 = vsub.f32 %v925_v29, %v1013_v34  ;;  %v323_v24 = vsub.f32 %v961_v37, %v1013_v34  ;;  %v334_v30 = vmul.f32 1.442695, %v320_v44  ;;  %v324_v31 = vsub.f32 %v972_v42, %v1011_v33 }
  0x2e   : > { %v328_v43 = vmul.f32 1.442695, %v317_v38  ;;  %v332_v48 = vmul.f32 1.442695, %v319_v40  ;;  %739 = vpow2.f32 %v326_v41  ;;  %v325_v49 = vsub.f32 %v979_v45, %v1013_v34 }
  0x2f   : > { %582 = vadd.xlane.f32.xlu0 %v581_v9  ;;  %v336_v25 = vmul.f32 1.442695, %v321_v47  ;;  %v338_v29 = vmul.f32 1.442695, %v322_v23  ;;  %v340_v50 = vmul.f32 1.442695, %v323_v24 }
  0x30   : > { %741 = vpow2.f32 %v328_v43  ;;  %v342_v51 = vmul.f32 1.442695, %v324_v31  ;;  %v344_v36 = vmul.f32 1.442695, %v325_v49  ;;  %v413_v40 = vrot.slane %v991_v52, 4 }
  0x31   : > { %743 = vpow2.f32 %v330_v46  ;;  %v424_v41 = vrot.slane %v993_v53, 4 }
  0x32   : > { %745 = vpow2.f32 %v332_v48  ;;  %v414_v46 = vadd.f32 %v413_v40, %v991_v52 }
  0x33   : > { %747 = vpow2.f32 %v334_v30  ;;  %v425_v47 = vadd.f32 %v424_v41, %v993_v53 }
  0x34   : > { %749 = vpow2.f32 %v336_v25 }
  0x35   : > { %751 = vpow2.f32 %v338_v29 }
  0x36   : > { %753 = vpow2.f32 %v340_v50  ;;  %v415_v50 = vrot.slane %v414_v46, 2 }
  0x37   : > { %755 = vpow2.f32 %v342_v51  ;;  %v426_v51 = vrot.slane %v425_v47, 2 }
  0x38   : > { %v740_v54 = vpop.eup %739  ;;  %757 = vpow2.f32 %v344_v36 }
  0x3a   : > { %v742_v37 = vpop.eup %741 }
  0x3b   : > { %v744_v55 = vpop.eup %743 }
  0x3c   : > { %v746_v56 = vpop.eup %745  ;;  %v346_v42 = vadd.f32 %v744_v55, %v740_v54 }
  0x3d   : > { %v748_v57 = vpop.eup %747  ;;  %v357_v58 = vadd.f32 %v746_v56, %v742_v37 }
  0x3e   : > { %v750_v59 = vpop.eup %749  ;;  %v347_v45 = vadd.f32 %v748_v57, %v346_v42 }
  0x3f   : > { %v752_v60 = vpop.eup %751  ;;  %v358_v62 = vadd.f32 %v750_v59, %v357_v58 }
  0x40   : > { %v754_v61 = vpop.eup %753  ;;  %v348_v1 = vadd.f32 %v752_v60, %v347_v45  ;;  %v416_v60 = vadd.f32 %v415_v50, %v414_v46  ;;  %v427_v45 = vadd.f32 %v426_v51, %v425_v47  ;;  %v500_v47 = vrot.slane %v888_v19, %v863_v10 }
  0x41   : > { %v756_v63 = vpop.eup %755  ;;  %v359_v3 = vadd.f32 %v754_v61, %v358_v62 }
  0x42   : > { %v758_v0 = vpop.eup %757  ;;  %v349_v2 = vsel %vm295_vm12, %v756_v63, 0.0  ;;  %v417_v17 = vrot.slane %v416_v60, 1 }
  0x43   : > { %v360_v6 = vsel %vm295_vm12, %v758_v0, 0.0  ;;  %v350_v7 = vadd.f32 %v349_v2, %v348_v1  ;;  %v428_v2 = vrot.slane %v427_v45, 1 }
  0x44   : > { %v361_v8 = vadd.f32 %v360_v6, %v359_v3 }
  0x45   : > { %v351_v9 = vrot.slane %v350_v7, 4 }
  0x46   : > { %v362_v12 = vrot.slane %v361_v8, 4 }
  0x47   : > { %v352_v13 = vadd.f32 %v351_v9, %v350_v7  ;;  %v418_v9 = vadd.f32 %v417_v17, %v416_v60 }
  0x48   : > { %v363_v15 = vadd.f32 %v362_v12, %v361_v8  ;;  %v429_v12 = vadd.f32 %v428_v2, %v427_v45 }
  0x49   : > { %v353_v20 = vrot.slane %v352_v13, 2 }
  0x4a   : > { %v364_v22 = vrot.slane %v363_v15, 2 }
  0x4b   : > { %v354_v26 = vadd.f32 %v353_v20, %v352_v13 }
  0x4c   : > { %v365_v27 = vadd.f32 %v364_v22, %v363_v15 }
  0x4d   : > { %v355_v32 = vrot.slane %v354_v26, 1 }
  0x4e   : > { %v366_v35 = vrot.slane %v365_v27, 1 }
  0x4f   : > { %v356_v38 = vadd.f32 %v355_v32, %v354_v26  ;;  %v789_v26 = vmov 1966171168  }
  0x50   : > { %v367_v39 = vadd.f32 %v366_v35, %v365_v27  ;;  %v513_v27 = vunpack.c.l.s4 %v789_v26 }
  0x51   : > { %759 = vlog2.f32 %v356_v38 }
  0x52   : > { %761 = vlog2.f32 %v367_v39 }
  0x5b   : > { %v760_v61 = vpop.eup %759 }
  0x5c   : > { %v762_v63 = vpop.eup %761  ;;  %v369_v3 = vmul.f32 0.6931472, %v760_v61 }
  0x5d   : > { %v371_v6 = vmul.f32 0.6931472, %v762_v63 }
  0x5e   : > { %v372_v13 = vadd.f32 %v369_v3, %v1011_v33  ;;  %v504_v33 = vrot.slane %v888_v19, %v866_v11 }
  0x5f   : > { %v373_v15 = vadd.f32 %v371_v6, %v1013_v34 }
  0x60   : > { %v489_v40 = vsub.f32 %v418_v9, %v372_v13 }
  0x61   : > { %v490_v41 = vsub.f32 %v429_v12, %v373_v15 }
  0x87   : > { %v443_v43 = vpop.permute.xlu1 %442  ;;  %v433_v44 = vpop.permute.xlu0 %432 }
  0x88   : > { %v455_v23 = vsel %vm388_vm4, %v433_v44, 0.0  ;;  %v456_v24 = vsel %vm389_vm5, %v433_v44, 0.0  ;;  %v459_v49 = vsel %vm392_vm2, %v443_v43, 0.0  ;;  %v460_v29 = vsel %vm393_vm3, %v443_v43, 0.0 }
  0x89   : > { %v514_v43 = vunpack.c.0.s8 %v513_v27 }
  0x8b   : > { %v438_v48 = vpop.permute.xlu0 %437  ;;  %v448_v52 = vpop.permute.xlu1 %447 }
  0x8c   : > { %v457_v30 = vsel %vm390_vm8, %v438_v48, 0.0  ;;  %v458_v31 = vsel %vm391_vm9, %v438_v48, 0.0  ;;  %v461_v21 = vsel %vm394_vm6, %v448_v52, 0.0  ;;  %v462_v55 = vsel %vm395_vm7, %v448_v52, 0.0 }
  0x8d   : > { %v465_v25 = vadd.f32 %v457_v30, %v455_v23  ;;  %v476_v53 = vadd.f32 %v458_v31, %v456_v24  ;;  %v517_v30 = vsub.s32 %v514_v43, %v845_v5 }
  0x8f   : > { %v466_v36 = vadd.f32 %v465_v25, %v459_v49  ;;  %v477_v54 = vadd.f32 %v476_v53, %v460_v29  ;;  %v453_v37 = vpop.permute.xlu0 %452  ;;  %v495_v25 = vld [vmem:[#allocation2] sm:$0x3] }
  0x90   : > { %v463_v56 = vsel %vm396_vm10, %v453_v37, 0.0  ;;  %v464_v14 = vsel %vm397_vm11, %v453_v37, 0.0 }
  0x91   : > { %v467_v42 = vadd.f32 %v466_v36, %v461_v21  ;;  %v468_v57 = vsel %vm295_vm12, %v463_v56, 0.0  ;;  %v478_v58 = vadd.f32 %v477_v54, %v462_v55  ;;  %v479_v59 = vsel %vm295_vm12, %v464_v14, 0.0 }
  0x93   : > { %v469_v62 = vadd.f32 %v468_v57, %v467_v42  ;;  %v480_v16 = vadd.f32 %v479_v59, %v478_v58 }
  0x95   : > { %v470_v0 = vrot.slane %v469_v62, 4  ;;  %v481_v1 = vrot.slane %v480_v16, 4 }
  0x97   : > { %v471_v18 = vadd.f32 %v470_v0, %v469_v62  ;;  %v482_v28 = vadd.f32 %v481_v1, %v480_v16 }
  0x99   : > { %v472_v7 = vrot.slane %v471_v18, 2  ;;  %v483_v8 = vrot.slane %v482_v28, 2 }
  0x9b   : > { %v473_v20 = vadd.f32 %v472_v7, %v471_v18  ;;  %v484_v22 = vadd.f32 %v483_v8, %v482_v28 }
  0x9d   : > { %v474_v32 = vrot.slane %v473_v20, 1  ;;  %v485_v35 = vrot.slane %v484_v22, 1 }
  0x9f   : > { %v475_v38 = vadd.f32 %v474_v32, %v473_v20  ;;  %v486_v39 = vadd.f32 %v485_v35, %v484_v22 }
  0xa1   : > { %v487_v44 = vsub.f32 0.0, %v475_v38  ;;  %v488_v46 = vsub.f32 0.0, %v486_v39 }
  0xa3   : > { %v491_v34 = vmul.f32 %v489_v40, %v487_v44  ;;  %v492_v48 = vmul.f32 %v490_v41, %v488_v46 }
  0xa5   : > { %v507_v23 = vmul.f32 %v500_v47, %v491_v34  ;;  %v508_v24 = vmul.f32 %v504_v33, %v492_v48 }
  0xa7   : > { %v511_v31 = vcombine.low %v507_v23, %v508_v24 }
  0xa9   : > { %v518_v52 = vrot.slane %v511_v31, %v517_v30 }
  0xab   : > { %v525_v53 = vrot.slane %v518_v52, %v517_v30 }
  0xad   : > { %v527_v49 = vadd.f32 %v525_v53, %v495_v25 }
  0xaf   : > { %532 = vst.msk [vmem:[#allocation2] sm:$0x3] %vm841_vm0, %v527_v49 }
  0xb6   : > { %v539_v29 = vld [vmem:[#allocation2] sm:$0x3] }
  0xb7   : > { %v544_v50 = vrot.slane %v539_v29, %v863_v10  ;;  %v548_v51 = vrot.slane %v539_v29, %v866_v11 }
  0xb9   : > { %v552_v19 = vsel %vm551_vm13, %v544_v50, 0.0  ;;  %v553_v36 = vsel %vm551_vm13, %v548_v51, 0.0 }
  0xba   : > { %v554_v54 = vadd.f32 %v553_v36, %v552_v19 }
  0xbc   : > { %555 = vadd.xlane.f32.xlu1 %v554_v54  ;;  %v583_v5 = vpop.xlane.xlu0 %582 }
  0xbd   : > { %v584_v37 = vrot.slane %v583_v5, 4 }
  0xbf   : > { %v585_v21 = vadd.f32 %v584_v37, %v583_v5 }
  0xc1   : > { %v586_v55 = vrot.slane %v585_v21, 2 }
  0xc3   : > { %v587_v42 = vadd.f32 %v586_v55, %v585_v21 }
  0xc5   : > { %v588_v58 = vrot.slane %v587_v42, 1 }
  0xc7   : > { %v589_v60 = vadd.f32 %v588_v58, %v587_v42 }
 0x149   : > { %v556_v56 = vpop.xlane.xlu1 %555 }
 0x14a   : > { %v557_v4 = vrot.slane %v556_v56, 4 }
 0x14c   : > { %v558_v14 = vadd.f32 %v557_v4, %v556_v56 }
 0x14e   : > { %v559_v57 = vrot.slane %v558_v14, 2 }
 0x150   : > { %v560_v10 = vadd.f32 %v559_v57, %v558_v14 }
 0x152   : > { %v561_v11 = vrot.slane %v560_v10, 1 }
 0x154   : > { %v562_v59 = vadd.f32 %v561_v11, %v560_v10 }
 0x156   : > { %706 = vpush %v562_v59 }
 0x157   : > { %708 = vpush %v589_v60 }
 0x187   : > { %s707_s14 = spop %706 }
 0x188   : > { %v564_v45 = vstv %s707_s14  ;;  %s709_s22 = spop %708 }
 0x189   : > { %566 = vst.msk [vmem:[%s260_s13] sm:$0x1] %vm565_vm14, %v564_v45  ;;  %v591_v61 = vstv %s709_s22 }
 0x18a   : > { %592 = vst.msk [vmem:[%s263_s21] sm:$0x1] %vm565_vm14, %v591_v61 }
 0x18b PF: > { %s15_s17 = sadd.s32 1, %s785_s17   ;;  %s1110_s15 = smov %s781_s16 }
 0x18c   : > { %p12_p5 = scmp.ge.s32.totalorder %s15_s17, 4   ;;  %s1111_s16 = smov %s1113_s18 }
 0x18e   :  { %14 = sbr.rel (!%p12_p5) target bundleno = 2 (0x2), region = 85 }

</bundles_post_ra>
